<compile_context>
chip_gen: v7x
topology: tpu7x:2x2x1
jax: 0.10.0
libtpu: 0.0.40
codegen_flags: <defaults>
</compile_context>

<pallas_src>
import functools

import jax
import jax.numpy as jnp
import numpy as np
from jax.experimental import pallas as pl
from jax.experimental.pallas import tpu as pltpu

# Row layout of the concatenated channels-first input (55 rows total).
_ROW_B1 = 0      # [x, y, w, h, c] of predicted box 1
_ROW_B2 = 5      # [x, y, w, h, c] of predicted box 2
_ROW_PCLS = 10   # 20 predicted class scores
_ROW_TBOX = 30   # [x, y, w, h] target box
_ROW_TCLS = 34   # 20 target class scores
_ROW_MASK = 54   # has_object mask (float {0,1})
_NUM_ROWS = 55

_LANES = 128
_MAX_TR = 256    # rows (of 128 cells) per grid step


# ----------------------------- kernel helpers -----------------------------

def _xyxy(x, y, w, h, S):
    cx = x / S
    cy = y / S
    return cx - 0.5 * w, cy - 0.5 * h, cx + 0.5 * w, cy + 0.5 * h


def _iou(px, py, pw, ph, tx, ty, tw, th, S):
    px1, py1, px2, py2 = _xyxy(px, py, pw, ph, S)
    tx1, ty1, tx2, ty2 = _xyxy(tx, ty, tw, th, S)
    iw = jnp.maximum(jnp.minimum(px2, tx2) - jnp.maximum(px1, tx1), 0.0)
    ih = jnp.maximum(jnp.minimum(py2, ty2) - jnp.maximum(py1, ty1), 0.0)
    inter = iw * ih
    area_p = (px2 - px1) * (py2 - py1)
    area_t = (tx2 - tx1) * (ty2 - ty1)
    # NOTE: no epsilon — matches the PyTorch compute_iou exactly.  Padding cells
    # (all-zero boxes) produce NaN here but are selected away by the object mask
    # (jnp.where on a bool mask) before any reduction, so the forward result is
    # unaffected.
    return inter / (area_p + area_t - inter)


# ------------------------------- the kernel --------------------------------

def yolo_loss_kernel(data_ref, out_ref, *, S):
    """One grid step over a (55, TR, 128) block of cells.

    Writes four (8, 128) lane-dense partial sums (class, noobj, reg, obj)
    stacked into this step's (32, 128) slice of the output.
    """
    # --- dense per-field planes, each (TR, 128) ---
    px1 = data_ref[_ROW_B1 + 0]
    py1 = data_ref[_ROW_B1 + 1]
    pw1 = data_ref[_ROW_B1 + 2]
    ph1 = data_ref[_ROW_B1 + 3]
    pc1 = data_ref[_ROW_B1 + 4]
    px2 = data_ref[_ROW_B2 + 0]
    py2 = data_ref[_ROW_B2 + 1]
    pw2 = data_ref[_ROW_B2 + 2]
    ph2 = data_ref[_ROW_B2 + 3]
    pc2 = data_ref[_ROW_B2 + 4]
    tx = data_ref[_ROW_TBOX + 0]
    ty = data_ref[_ROW_TBOX + 1]
    tw = data_ref[_ROW_TBOX + 2]
    th = data_ref[_ROW_TBOX + 3]
    m_f = data_ref[_ROW_MASK]
    m_b = m_f > 0.5
    not_m = 1.0 - m_f

    # ---- class prediction loss (cells containing an object) ----
    # Statically unrolled per-channel accumulation: keeps live temporaries to a
    # few (TR,128) planes instead of a (20,TR,128) VMEM slab.
    cls_sq = None
    for c in range(20):
        d = data_ref[_ROW_PCLS + c] - data_ref[_ROW_TCLS + c]
        cls_sq = d * d if cls_sq is None else cls_sq + d * d
    class_p = jnp.where(m_b, cls_sq, 0.0)

    # ---- no-object confidence loss (cells without an object, both boxes) ----
    # mask is {0,1} so (c * not_m)^2 == c^2 * not_m.
    noobj_p = (pc1 * pc1 + pc2 * pc2) * not_m

    # ---- best-IoU box selection (per cell, diag of compute_iou) ----
    iou1 = _iou(px1, py1, pw1, ph1, tx, ty, tw, th, S)
    iou2 = _iou(px2, py2, pw2, ph2, tx, ty, tw, th, S)
    sel = iou1 >= iou2                                    # ties pick box 1 (as in torch)
    bx = jnp.where(sel, px1, px2)
    by = jnp.where(sel, py1, py2)
    bw = jnp.where(sel, pw1, pw2)
    bh = jnp.where(sel, ph1, ph2)
    bc = jnp.where(sel, pc1, pc2)
    best_iou = jnp.where(sel, iou1, iou2)

    # ---- regression loss (no clamping: matches the PyTorch sqrt exactly) ----
    d_xy = (bx - tx) ** 2 + (by - ty) ** 2
    d_wh = (jnp.sqrt(bw) - jnp.sqrt(tw)) ** 2 + (jnp.sqrt(bh) - jnp.sqrt(th)) ** 2
    reg_p = jnp.where(m_b, d_xy + d_wh, 0.0)

    # ---- containing-object confidence loss ----
    obj_p = jnp.where(m_b, (bc - best_iou) ** 2, 0.0)

    # ---- fold (TR,128) -> (8,128): sublane-strided VPU adds, no XLU work ----
    def fold(x):
        return jnp.sum(x.reshape(-1, 8, _LANES), axis=0)

    out_ref[0:8, :] = fold(class_p)
    out_ref[8:16, :] = fold(noobj_p)
    out_ref[16:24, :] = fold(reg_p)
    out_ref[24:32, :] = fold(obj_p)


# -------------------------------- wrapper -----------------------------------

def yolo_loss(pred_tensor, target_boxes, target_cls, has_object_map,
              *, S, B=2, l_coord=5.0, l_noobj=0.5):
    assert B == 2, "kernel hard-codes the YOLOv1 B=2 box split (5,5,20)"
    N = pred_tensor.shape[0]
    P = N * S * S

    # Rows of 128 cells; pick the largest row-tile up to _MAX_TR (32K cells/step).
    R = pl.cdiv(P, _LANES)
    TR = min(_MAX_TR, ((R + 7) // 8) * 8)
    Rpad = ((R + TR - 1) // TR) * TR
    Ppad = Rpad * _LANES
    G = Rpad // TR

    # Single concatenated channels-first array (one concat + pad + transpose pass).
    cells = jnp.concatenate(
        [
            pred_tensor.reshape(P, 5 * B + 20).astype(jnp.float32),
            target_boxes.reshape(P, 4).astype(jnp.float32),
            target_cls.reshape(P, 20).astype(jnp.float32),
            has_object_map.reshape(P, 1).astype(jnp.float32),
        ],
        axis=1,
    )                                                    # (P, 55)
    cells = jnp.pad(cells, ((0, Ppad - P), (0, 0)))      # padding cells: zeros, mask=0
    data = cells.T.reshape(_NUM_ROWS, Rpad, _LANES)      # (55, Rpad, 128)

    kernel = functools.partial(yolo_loss_kernel, S=float(S))
    parts = pl.pallas_call(
        kernel,
        out_shape=jax.ShapeDtypeStruct((G * 32, _LANES), jnp.float32),
        grid=(G,),
        in_specs=[pl.BlockSpec((_NUM_ROWS, TR, _LANES), lambda i: (0, i, 0))],
        out_specs=pl.BlockSpec((32, _LANES), lambda i: (i, 0)),
        compiler_params=pltpu.CompilerParams(
            dimension_semantics=("parallel",),           # shardable across v7x's 2 TCs
            vmem_limit_bytes=40 * 1024 * 1024,
        ),
    )(data)

    # Final tiny reduction of the lane-dense partial sums in the wrapper.
    sums = parts.reshape(G, 4, 8, _LANES).sum(axis=(0, 2, 3))
    class_loss, noobj_loss, reg_loss, obj_loss = sums[0], sums[1], sums[2], sums[3]
    total = class_loss + l_noobj * noobj_loss + l_coord * reg_loss + obj_loss
    return dict(
        total_loss=total / N,
        reg_loss=reg_loss / N,
        containing_obj_loss=obj_loss / N,
        no_obj_loss=noobj_loss / N,
        cls_loss=class_loss / N,
    )


# --------------------------- pure-JAX reference -----------------------------

def yolo_loss_ref(pred, tbox, tcls, mask, *, S, l_coord, l_noobj):
    N = pred.shape[0]
    b1, b2, cls = pred[..., 0:5], pred[..., 5:10], pred[..., 10:30]
    class_loss = jnp.sum(jnp.where(mask[..., None], (cls - tcls) ** 2, 0.0))
    noobj = jnp.sum((b1[..., 4] * (~mask)) ** 2) + jnp.sum((b2[..., 4] * (~mask)) ** 2)

    def iou(b, t):
        bx1 = b[..., 0] / S - 0.5 * b[..., 2]; by1 = b[..., 1] / S - 0.5 * b[..., 3]
        bx2 = b[..., 0] / S + 0.5 * b[..., 2]; by2 = b[..., 1] / S + 0.5 * b[..., 3]
        tx1 = t[..., 0] / S - 0.5 * t[..., 2]; ty1 = t[..., 1] / S - 0.5 * t[..., 3]
        tx2 = t[..., 0] / S + 0.5 * t[..., 2]; ty2 = t[..., 1] / S + 0.5 * t[..., 3]
        iw = jnp.maximum(jnp.minimum(bx2, tx2) - jnp.maximum(bx1, tx1), 0.0)
        ih = jnp.maximum(jnp.minimum(by2, ty2) - jnp.maximum(by1, ty1), 0.0)
        inter = iw * ih
        return inter / ((bx2 - bx1) * (by2 - by1) + (tx2 - tx1) * (ty2 - ty1) - inter)

    i1, i2 = iou(b1, tbox), iou(b2, tbox)
    sel = i1 >= i2
    best = jnp.where(sel[..., None], b1, b2)
    best_iou = jnp.where(sel, i1, i2)
    d_xy = (best[..., 0] - tbox[..., 0]) ** 2 + (best[..., 1] - tbox[..., 1]) ** 2
    d_wh = (jnp.sqrt(best[..., 2]) - jnp.sqrt(tbox[..., 2])) ** 2 \
         + (jnp.sqrt(best[..., 3]) - jnp.sqrt(tbox[..., 3])) ** 2
    reg = jnp.sum(jnp.where(mask, d_xy + d_wh, 0.0))
    obj = jnp.sum(jnp.where(mask, (best[..., 4] - best_iou) ** 2, 0.0))
    total = class_loss + l_noobj * noobj + l_coord * reg + obj
    return dict(total_loss=total / N, reg_loss=reg / N, containing_obj_loss=obj / N,
                no_obj_loss=noobj / N, cls_loss=class_loss / N)


# ---------------------------------- main -------------------------------------

if __name__ == "__main__":
    S, B, l_coord, l_noobj = 14, 2, 5.0, 0.5
    N = 2

    key = jax.random.PRNGKey(0)
    k1, k2, k3, k4 = jax.random.split(key, 4)
    # pred: [x,y,w,h,c]*2 + 20 classes; keep w,h,conf positive (as a real net would via sigmoid)
    pred_tensor = jax.random.uniform(k1, (N, S, S, 5 * B + 20), jnp.float32, 0.01, 1.0)
    target_boxes = jax.random.uniform(k2, (N, S, S, 4), jnp.float32, 0.05, 1.0)
    target_cls = jax.random.uniform(k3, (N, S, S, 20), jnp.float32, 0.0, 1.0)
    has_object_map = jax.random.bernoulli(k4, 0.3, (N, S, S))

    out = yolo_loss(pred_tensor, target_boxes, target_cls, has_object_map,
                    S=S, B=B, l_coord=l_coord, l_noobj=l_noobj)
    out = jax.block_until_ready(out)

    ref = yolo_loss_ref(pred_tensor, target_boxes, target_cls, has_object_map,
                        S=S, l_coord=l_coord, l_noobj=l_noobj)
    for k in out:
        np.testing.assert_allclose(np.asarray(out[k]), np.asarray(ref[k]),
                                   rtol=2e-4, atol=1e-3)

    # TODO(synk): requires_grad / .detach() / .clone() semantics from the PyTorch
    # module are autograd-only bookkeeping with no forward-pass equivalent;
    # forward values match exactly.
    print("KERNEL_OK")
</pallas_src>

<mosaic_0001>
module attributes {stable_mosaic.version = 11 : i64} {
  func.func @yolo_loss_kernel(%arg0: i32, %arg1: memref<55x8x128xf32, #tpu.memory_space<vmem>>, %arg2: memref<32x128xf32, #tpu.memory_space<vmem>>) attributes {dimension_semantics = [#tpu.dimension_semantics<parallel>], iteration_bounds = array<i64: 1>, scalar_prefetch = 0 : i64, scratch_operands = 0 : i64, tpu.core_type = #tpu.core_type<tc>, window_params = [{transform_indices = @transform_0, window_bounds = array<i64: 55, 8, 128>}, {transform_indices = @transform_1, window_bounds = array<i64: 32, 128>}]} {
    %c0 = arith.constant 0 : index
    %c0_0 = arith.constant 0 : index
    %c0_1 = arith.constant 0 : index
    %0 = vector.load %arg1[%c0, %c0_0, %c0_1] : memref<55x8x128xf32, #tpu.memory_space<vmem>>, vector<1x8x128xf32>
    %1 = vector.shape_cast %0 : vector<1x8x128xf32> to vector<8x128xf32>
    %c1 = arith.constant 1 : index
    %c0_2 = arith.constant 0 : index
    %c0_3 = arith.constant 0 : index
    %2 = vector.load %arg1[%c1, %c0_2, %c0_3] : memref<55x8x128xf32, #tpu.memory_space<vmem>>, vector<1x8x128xf32>
    %3 = vector.shape_cast %2 : vector<1x8x128xf32> to vector<8x128xf32>
    %c2 = arith.constant 2 : index
    %c0_4 = arith.constant 0 : index
    %c0_5 = arith.constant 0 : index
    %4 = vector.load %arg1[%c2, %c0_4, %c0_5] : memref<55x8x128xf32, #tpu.memory_space<vmem>>, vector<1x8x128xf32>
    %5 = vector.shape_cast %4 : vector<1x8x128xf32> to vector<8x128xf32>
    %c3 = arith.constant 3 : index
    %c0_6 = arith.constant 0 : index
    %c0_7 = arith.constant 0 : index
    %6 = vector.load %arg1[%c3, %c0_6, %c0_7] : memref<55x8x128xf32, #tpu.memory_space<vmem>>, vector<1x8x128xf32>
    %7 = vector.shape_cast %6 : vector<1x8x128xf32> to vector<8x128xf32>
    %c4 = arith.constant 4 : index
    %c0_8 = arith.constant 0 : index
    %c0_9 = arith.constant 0 : index
    %8 = vector.load %arg1[%c4, %c0_8, %c0_9] : memref<55x8x128xf32, #tpu.memory_space<vmem>>, vector<1x8x128xf32>
    %9 = vector.shape_cast %8 : vector<1x8x128xf32> to vector<8x128xf32>
    %c5 = arith.constant 5 : index
    %c0_10 = arith.constant 0 : index
    %c0_11 = arith.constant 0 : index
    %10 = vector.load %arg1[%c5, %c0_10, %c0_11] : memref<55x8x128xf32, #tpu.memory_space<vmem>>, vector<1x8x128xf32>
    %11 = vector.shape_cast %10 : vector<1x8x128xf32> to vector<8x128xf32>
    %c6 = arith.constant 6 : index
    %c0_12 = arith.constant 0 : index
    %c0_13 = arith.constant 0 : index
    %12 = vector.load %arg1[%c6, %c0_12, %c0_13] : memref<55x8x128xf32, #tpu.memory_space<vmem>>, vector<1x8x128xf32>
    %13 = vector.shape_cast %12 : vector<1x8x128xf32> to vector<8x128xf32>
    %c7 = arith.constant 7 : index
    %c0_14 = arith.constant 0 : index
    %c0_15 = arith.constant 0 : index
    %14 = vector.load %arg1[%c7, %c0_14, %c0_15] : memref<55x8x128xf32, #tpu.memory_space<vmem>>, vector<1x8x128xf32>
    %15 = vector.shape_cast %14 : vector<1x8x128xf32> to vector<8x128xf32>
    %c8 = arith.constant 8 : index
    %c0_16 = arith.constant 0 : index
    %c0_17 = arith.constant 0 : index
    %16 = vector.load %arg1[%c8, %c0_16, %c0_17] : memref<55x8x128xf32, #tpu.memory_space<vmem>>, vector<1x8x128xf32>
    %17 = vector.shape_cast %16 : vector<1x8x128xf32> to vector<8x128xf32>
    %c9 = arith.constant 9 : index
    %c0_18 = arith.constant 0 : index
    %c0_19 = arith.constant 0 : index
    %18 = vector.load %arg1[%c9, %c0_18, %c0_19] : memref<55x8x128xf32, #tpu.memory_space<vmem>>, vector<1x8x128xf32>
    %19 = vector.shape_cast %18 : vector<1x8x128xf32> to vector<8x128xf32>
    %c30 = arith.constant 30 : index
    %c0_20 = arith.constant 0 : index
    %c0_21 = arith.constant 0 : index
    %20 = vector.load %arg1[%c30, %c0_20, %c0_21] : memref<55x8x128xf32, #tpu.memory_space<vmem>>, vector<1x8x128xf32>
    %21 = vector.shape_cast %20 : vector<1x8x128xf32> to vector<8x128xf32>
    %c31 = arith.constant 31 : index
    %c0_22 = arith.constant 0 : index
    %c0_23 = arith.constant 0 : index
    %22 = vector.load %arg1[%c31, %c0_22, %c0_23] : memref<55x8x128xf32, #tpu.memory_space<vmem>>, vector<1x8x128xf32>
    %23 = vector.shape_cast %22 : vector<1x8x128xf32> to vector<8x128xf32>
    %c32 = arith.constant 32 : index
    %c0_24 = arith.constant 0 : index
    %c0_25 = arith.constant 0 : index
    %24 = vector.load %arg1[%c32, %c0_24, %c0_25] : memref<55x8x128xf32, #tpu.memory_space<vmem>>, vector<1x8x128xf32>
    %25 = vector.shape_cast %24 : vector<1x8x128xf32> to vector<8x128xf32>
    %c33 = arith.constant 33 : index
    %c0_26 = arith.constant 0 : index
    %c0_27 = arith.constant 0 : index
    %26 = vector.load %arg1[%c33, %c0_26, %c0_27] : memref<55x8x128xf32, #tpu.memory_space<vmem>>, vector<1x8x128xf32>
    %27 = vector.shape_cast %26 : vector<1x8x128xf32> to vector<8x128xf32>
    %c54 = arith.constant 54 : index
    %c0_28 = arith.constant 0 : index
    %c0_29 = arith.constant 0 : index
    %28 = vector.load %arg1[%c54, %c0_28, %c0_29] : memref<55x8x128xf32, #tpu.memory_space<vmem>>, vector<1x8x128xf32>
    %29 = vector.shape_cast %28 : vector<1x8x128xf32> to vector<8x128xf32>
    %cst = arith.constant 5.000000e-01 : f32
    %30 = vector.broadcast %cst : f32 to vector<8x128xf32>
    %31 = arith.cmpf ogt, %29, %30 : vector<8x128xf32>
    %cst_30 = arith.constant 1.000000e+00 : f32
    %32 = vector.broadcast %cst_30 : f32 to vector<8x128xf32>
    %33 = arith.subf %32, %29 : vector<8x128xf32>
    %c10 = arith.constant 10 : index
    %c0_31 = arith.constant 0 : index
    %c0_32 = arith.constant 0 : index
    %34 = vector.load %arg1[%c10, %c0_31, %c0_32] : memref<55x8x128xf32, #tpu.memory_space<vmem>>, vector<1x8x128xf32>
    %35 = vector.shape_cast %34 : vector<1x8x128xf32> to vector<8x128xf32>
    %c34 = arith.constant 34 : index
    %c0_33 = arith.constant 0 : index
    %c0_34 = arith.constant 0 : index
    %36 = vector.load %arg1[%c34, %c0_33, %c0_34] : memref<55x8x128xf32, #tpu.memory_space<vmem>>, vector<1x8x128xf32>
    %37 = vector.shape_cast %36 : vector<1x8x128xf32> to vector<8x128xf32>
    %38 = arith.subf %35, %37 : vector<8x128xf32>
    %39 = arith.mulf %38, %38 : vector<8x128xf32>
    %c11 = arith.constant 11 : index
    %c0_35 = arith.constant 0 : index
    %c0_36 = arith.constant 0 : index
    %40 = vector.load %arg1[%c11, %c0_35, %c0_36] : memref<55x8x128xf32, #tpu.memory_space<vmem>>, vector<1x8x128xf32>
    %41 = vector.shape_cast %40 : vector<1x8x128xf32> to vector<8x128xf32>
    %c35 = arith.constant 35 : index
    %c0_37 = arith.constant 0 : index
    %c0_38 = arith.constant 0 : index
    %42 = vector.load %arg1[%c35, %c0_37, %c0_38] : memref<55x8x128xf32, #tpu.memory_space<vmem>>, vector<1x8x128xf32>
    %43 = vector.shape_cast %42 : vector<1x8x128xf32> to vector<8x128xf32>
    %44 = arith.subf %41, %43 : vector<8x128xf32>
    %45 = arith.mulf %44, %44 : vector<8x128xf32>
    %46 = arith.addf %39, %45 : vector<8x128xf32>
    %c12 = arith.constant 12 : index
    %c0_39 = arith.constant 0 : index
    %c0_40 = arith.constant 0 : index
    %47 = vector.load %arg1[%c12, %c0_39, %c0_40] : memref<55x8x128xf32, #tpu.memory_space<vmem>>, vector<1x8x128xf32>
    %48 = vector.shape_cast %47 : vector<1x8x128xf32> to vector<8x128xf32>
    %c36 = arith.constant 36 : index
    %c0_41 = arith.constant 0 : index
    %c0_42 = arith.constant 0 : index
    %49 = vector.load %arg1[%c36, %c0_41, %c0_42] : memref<55x8x128xf32, #tpu.memory_space<vmem>>, vector<1x8x128xf32>
    %50 = vector.shape_cast %49 : vector<1x8x128xf32> to vector<8x128xf32>
    %51 = arith.subf %48, %50 : vector<8x128xf32>
    %52 = arith.mulf %51, %51 : vector<8x128xf32>
    %53 = arith.addf %46, %52 : vector<8x128xf32>
    %c13 = arith.constant 13 : index
    %c0_43 = arith.constant 0 : index
    %c0_44 = arith.constant 0 : index
    %54 = vector.load %arg1[%c13, %c0_43, %c0_44] : memref<55x8x128xf32, #tpu.memory_space<vmem>>, vector<1x8x128xf32>
    %55 = vector.shape_cast %54 : vector<1x8x128xf32> to vector<8x128xf32>
    %c37 = arith.constant 37 : index
    %c0_45 = arith.constant 0 : index
    %c0_46 = arith.constant 0 : index
    %56 = vector.load %arg1[%c37, %c0_45, %c0_46] : memref<55x8x128xf32, #tpu.memory_space<vmem>>, vector<1x8x128xf32>
    %57 = vector.shape_cast %56 : vector<1x8x128xf32> to vector<8x128xf32>
    %58 = arith.subf %55, %57 : vector<8x128xf32>
    %59 = arith.mulf %58, %58 : vector<8x128xf32>
    %60 = arith.addf %53, %59 : vector<8x128xf32>
    %c14 = arith.constant 14 : index
    %c0_47 = arith.constant 0 : index
    %c0_48 = arith.constant 0 : index
    %61 = vector.load %arg1[%c14, %c0_47, %c0_48] : memref<55x8x128xf32, #tpu.memory_space<vmem>>, vector<1x8x128xf32>
    %62 = vector.shape_cast %61 : vector<1x8x128xf32> to vector<8x128xf32>
    %c38 = arith.constant 38 : index
    %c0_49 = arith.constant 0 : index
    %c0_50 = arith.constant 0 : index
    %63 = vector.load %arg1[%c38, %c0_49, %c0_50] : memref<55x8x128xf32, #tpu.memory_space<vmem>>, vector<1x8x128xf32>
    %64 = vector.shape_cast %63 : vector<1x8x128xf32> to vector<8x128xf32>
    %65 = arith.subf %62, %64 : vector<8x128xf32>
    %66 = arith.mulf %65, %65 : vector<8x128xf32>
    %67 = arith.addf %60, %66 : vector<8x128xf32>
    %c15 = arith.constant 15 : index
    %c0_51 = arith.constant 0 : index
    %c0_52 = arith.constant 0 : index
    %68 = vector.load %arg1[%c15, %c0_51, %c0_52] : memref<55x8x128xf32, #tpu.memory_space<vmem>>, vector<1x8x128xf32>
    %69 = vector.shape_cast %68 : vector<1x8x128xf32> to vector<8x128xf32>
    %c39 = arith.constant 39 : index
    %c0_53 = arith.constant 0 : index
    %c0_54 = arith.constant 0 : index
    %70 = vector.load %arg1[%c39, %c0_53, %c0_54] : memref<55x8x128xf32, #tpu.memory_space<vmem>>, vector<1x8x128xf32>
    %71 = vector.shape_cast %70 : vector<1x8x128xf32> to vector<8x128xf32>
    %72 = arith.subf %69, %71 : vector<8x128xf32>
    %73 = arith.mulf %72, %72 : vector<8x128xf32>
    %74 = arith.addf %67, %73 : vector<8x128xf32>
    %c16 = arith.constant 16 : index
    %c0_55 = arith.constant 0 : index
    %c0_56 = arith.constant 0 : index
    %75 = vector.load %arg1[%c16, %c0_55, %c0_56] : memref<55x8x128xf32, #tpu.memory_space<vmem>>, vector<1x8x128xf32>
    %76 = vector.shape_cast %75 : vector<1x8x128xf32> to vector<8x128xf32>
    %c40 = arith.constant 40 : index
    %c0_57 = arith.constant 0 : index
    %c0_58 = arith.constant 0 : index
    %77 = vector.load %arg1[%c40, %c0_57, %c0_58] : memref<55x8x128xf32, #tpu.memory_space<vmem>>, vector<1x8x128xf32>
    %78 = vector.shape_cast %77 : vector<1x8x128xf32> to vector<8x128xf32>
    %79 = arith.subf %76, %78 : vector<8x128xf32>
    %80 = arith.mulf %79, %79 : vector<8x128xf32>
    %81 = arith.addf %74, %80 : vector<8x128xf32>
    %c17 = arith.constant 17 : index
    %c0_59 = arith.constant 0 : index
    %c0_60 = arith.constant 0 : index
    %82 = vector.load %arg1[%c17, %c0_59, %c0_60] : memref<55x8x128xf32, #tpu.memory_space<vmem>>, vector<1x8x128xf32>
    %83 = vector.shape_cast %82 : vector<1x8x128xf32> to vector<8x128xf32>
    %c41 = arith.constant 41 : index
    %c0_61 = arith.constant 0 : index
    %c0_62 = arith.constant 0 : index
    %84 = vector.load %arg1[%c41, %c0_61, %c0_62] : memref<55x8x128xf32, #tpu.memory_space<vmem>>, vector<1x8x128xf32>
    %85 = vector.shape_cast %84 : vector<1x8x128xf32> to vector<8x128xf32>
    %86 = arith.subf %83, %85 : vector<8x128xf32>
    %87 = arith.mulf %86, %86 : vector<8x128xf32>
    %88 = arith.addf %81, %87 : vector<8x128xf32>
    %c18 = arith.constant 18 : index
    %c0_63 = arith.constant 0 : index
    %c0_64 = arith.constant 0 : index
    %89 = vector.load %arg1[%c18, %c0_63, %c0_64] : memref<55x8x128xf32, #tpu.memory_space<vmem>>, vector<1x8x128xf32>
    %90 = vector.shape_cast %89 : vector<1x8x128xf32> to vector<8x128xf32>
    %c42 = arith.constant 42 : index
    %c0_65 = arith.constant 0 : index
    %c0_66 = arith.constant 0 : index
    %91 = vector.load %arg1[%c42, %c0_65, %c0_66] : memref<55x8x128xf32, #tpu.memory_space<vmem>>, vector<1x8x128xf32>
    %92 = vector.shape_cast %91 : vector<1x8x128xf32> to vector<8x128xf32>
    %93 = arith.subf %90, %92 : vector<8x128xf32>
    %94 = arith.mulf %93, %93 : vector<8x128xf32>
    %95 = arith.addf %88, %94 : vector<8x128xf32>
    %c19 = arith.constant 19 : index
    %c0_67 = arith.constant 0 : index
    %c0_68 = arith.constant 0 : index
    %96 = vector.load %arg1[%c19, %c0_67, %c0_68] : memref<55x8x128xf32, #tpu.memory_space<vmem>>, vector<1x8x128xf32>
    %97 = vector.shape_cast %96 : vector<1x8x128xf32> to vector<8x128xf32>
    %c43 = arith.constant 43 : index
    %c0_69 = arith.constant 0 : index
    %c0_70 = arith.constant 0 : index
    %98 = vector.load %arg1[%c43, %c0_69, %c0_70] : memref<55x8x128xf32, #tpu.memory_space<vmem>>, vector<1x8x128xf32>
    %99 = vector.shape_cast %98 : vector<1x8x128xf32> to vector<8x128xf32>
    %100 = arith.subf %97, %99 : vector<8x128xf32>
    %101 = arith.mulf %100, %100 : vector<8x128xf32>
    %102 = arith.addf %95, %101 : vector<8x128xf32>
    %c20 = arith.constant 20 : index
    %c0_71 = arith.constant 0 : index
    %c0_72 = arith.constant 0 : index
    %103 = vector.load %arg1[%c20, %c0_71, %c0_72] : memref<55x8x128xf32, #tpu.memory_space<vmem>>, vector<1x8x128xf32>
    %104 = vector.shape_cast %103 : vector<1x8x128xf32> to vector<8x128xf32>
    %c44 = arith.constant 44 : index
    %c0_73 = arith.constant 0 : index
    %c0_74 = arith.constant 0 : index
    %105 = vector.load %arg1[%c44, %c0_73, %c0_74] : memref<55x8x128xf32, #tpu.memory_space<vmem>>, vector<1x8x128xf32>
    %106 = vector.shape_cast %105 : vector<1x8x128xf32> to vector<8x128xf32>
    %107 = arith.subf %104, %106 : vector<8x128xf32>
    %108 = arith.mulf %107, %107 : vector<8x128xf32>
    %109 = arith.addf %102, %108 : vector<8x128xf32>
    %c21 = arith.constant 21 : index
    %c0_75 = arith.constant 0 : index
    %c0_76 = arith.constant 0 : index
    %110 = vector.load %arg1[%c21, %c0_75, %c0_76] : memref<55x8x128xf32, #tpu.memory_space<vmem>>, vector<1x8x128xf32>
    %111 = vector.shape_cast %110 : vector<1x8x128xf32> to vector<8x128xf32>
    %c45 = arith.constant 45 : index
    %c0_77 = arith.constant 0 : index
    %c0_78 = arith.constant 0 : index
    %112 = vector.load %arg1[%c45, %c0_77, %c0_78] : memref<55x8x128xf32, #tpu.memory_space<vmem>>, vector<1x8x128xf32>
    %113 = vector.shape_cast %112 : vector<1x8x128xf32> to vector<8x128xf32>
    %114 = arith.subf %111, %113 : vector<8x128xf32>
    %115 = arith.mulf %114, %114 : vector<8x128xf32>
    %116 = arith.addf %109, %115 : vector<8x128xf32>
    %c22 = arith.constant 22 : index
    %c0_79 = arith.constant 0 : index
    %c0_80 = arith.constant 0 : index
    %117 = vector.load %arg1[%c22, %c0_79, %c0_80] : memref<55x8x128xf32, #tpu.memory_space<vmem>>, vector<1x8x128xf32>
    %118 = vector.shape_cast %117 : vector<1x8x128xf32> to vector<8x128xf32>
    %c46 = arith.constant 46 : index
    %c0_81 = arith.constant 0 : index
    %c0_82 = arith.constant 0 : index
    %119 = vector.load %arg1[%c46, %c0_81, %c0_82] : memref<55x8x128xf32, #tpu.memory_space<vmem>>, vector<1x8x128xf32>
    %120 = vector.shape_cast %119 : vector<1x8x128xf32> to vector<8x128xf32>
    %121 = arith.subf %118, %120 : vector<8x128xf32>
    %122 = arith.mulf %121, %121 : vector<8x128xf32>
    %123 = arith.addf %116, %122 : vector<8x128xf32>
    %c23 = arith.constant 23 : index
    %c0_83 = arith.constant 0 : index
    %c0_84 = arith.constant 0 : index
    %124 = vector.load %arg1[%c23, %c0_83, %c0_84] : memref<55x8x128xf32, #tpu.memory_space<vmem>>, vector<1x8x128xf32>
    %125 = vector.shape_cast %124 : vector<1x8x128xf32> to vector<8x128xf32>
    %c47 = arith.constant 47 : index
    %c0_85 = arith.constant 0 : index
    %c0_86 = arith.constant 0 : index
    %126 = vector.load %arg1[%c47, %c0_85, %c0_86] : memref<55x8x128xf32, #tpu.memory_space<vmem>>, vector<1x8x128xf32>
    %127 = vector.shape_cast %126 : vector<1x8x128xf32> to vector<8x128xf32>
    %128 = arith.subf %125, %127 : vector<8x128xf32>
    %129 = arith.mulf %128, %128 : vector<8x128xf32>
    %130 = arith.addf %123, %129 : vector<8x128xf32>
    %c24 = arith.constant 24 : index
    %c0_87 = arith.constant 0 : index
    %c0_88 = arith.constant 0 : index
    %131 = vector.load %arg1[%c24, %c0_87, %c0_88] : memref<55x8x128xf32, #tpu.memory_space<vmem>>, vector<1x8x128xf32>
    %132 = vector.shape_cast %131 : vector<1x8x128xf32> to vector<8x128xf32>
    %c48 = arith.constant 48 : index
    %c0_89 = arith.constant 0 : index
    %c0_90 = arith.constant 0 : index
    %133 = vector.load %arg1[%c48, %c0_89, %c0_90] : memref<55x8x128xf32, #tpu.memory_space<vmem>>, vector<1x8x128xf32>
    %134 = vector.shape_cast %133 : vector<1x8x128xf32> to vector<8x128xf32>
    %135 = arith.subf %132, %134 : vector<8x128xf32>
    %136 = arith.mulf %135, %135 : vector<8x128xf32>
    %137 = arith.addf %130, %136 : vector<8x128xf32>
    %c25 = arith.constant 25 : index
    %c0_91 = arith.constant 0 : index
    %c0_92 = arith.constant 0 : index
    %138 = vector.load %arg1[%c25, %c0_91, %c0_92] : memref<55x8x128xf32, #tpu.memory_space<vmem>>, vector<1x8x128xf32>
    %139 = vector.shape_cast %138 : vector<1x8x128xf32> to vector<8x128xf32>
    %c49 = arith.constant 49 : index
    %c0_93 = arith.constant 0 : index
    %c0_94 = arith.constant 0 : index
    %140 = vector.load %arg1[%c49, %c0_93, %c0_94] : memref<55x8x128xf32, #tpu.memory_space<vmem>>, vector<1x8x128xf32>
    %141 = vector.shape_cast %140 : vector<1x8x128xf32> to vector<8x128xf32>
    %142 = arith.subf %139, %141 : vector<8x128xf32>
    %143 = arith.mulf %142, %142 : vector<8x128xf32>
    %144 = arith.addf %137, %143 : vector<8x128xf32>
    %c26 = arith.constant 26 : index
    %c0_95 = arith.constant 0 : index
    %c0_96 = arith.constant 0 : index
    %145 = vector.load %arg1[%c26, %c0_95, %c0_96] : memref<55x8x128xf32, #tpu.memory_space<vmem>>, vector<1x8x128xf32>
    %146 = vector.shape_cast %145 : vector<1x8x128xf32> to vector<8x128xf32>
    %c50 = arith.constant 50 : index
    %c0_97 = arith.constant 0 : index
    %c0_98 = arith.constant 0 : index
    %147 = vector.load %arg1[%c50, %c0_97, %c0_98] : memref<55x8x128xf32, #tpu.memory_space<vmem>>, vector<1x8x128xf32>
    %148 = vector.shape_cast %147 : vector<1x8x128xf32> to vector<8x128xf32>
    %149 = arith.subf %146, %148 : vector<8x128xf32>
    %150 = arith.mulf %149, %149 : vector<8x128xf32>
    %151 = arith.addf %144, %150 : vector<8x128xf32>
    %c27 = arith.constant 27 : index
    %c0_99 = arith.constant 0 : index
    %c0_100 = arith.constant 0 : index
    %152 = vector.load %arg1[%c27, %c0_99, %c0_100] : memref<55x8x128xf32, #tpu.memory_space<vmem>>, vector<1x8x128xf32>
    %153 = vector.shape_cast %152 : vector<1x8x128xf32> to vector<8x128xf32>
    %c51 = arith.constant 51 : index
    %c0_101 = arith.constant 0 : index
    %c0_102 = arith.constant 0 : index
    %154 = vector.load %arg1[%c51, %c0_101, %c0_102] : memref<55x8x128xf32, #tpu.memory_space<vmem>>, vector<1x8x128xf32>
    %155 = vector.shape_cast %154 : vector<1x8x128xf32> to vector<8x128xf32>
    %156 = arith.subf %153, %155 : vector<8x128xf32>
    %157 = arith.mulf %156, %156 : vector<8x128xf32>
    %158 = arith.addf %151, %157 : vector<8x128xf32>
    %c28 = arith.constant 28 : index
    %c0_103 = arith.constant 0 : index
    %c0_104 = arith.constant 0 : index
    %159 = vector.load %arg1[%c28, %c0_103, %c0_104] : memref<55x8x128xf32, #tpu.memory_space<vmem>>, vector<1x8x128xf32>
    %160 = vector.shape_cast %159 : vector<1x8x128xf32> to vector<8x128xf32>
    %c52 = arith.constant 52 : index
    %c0_105 = arith.constant 0 : index
    %c0_106 = arith.constant 0 : index
    %161 = vector.load %arg1[%c52, %c0_105, %c0_106] : memref<55x8x128xf32, #tpu.memory_space<vmem>>, vector<1x8x128xf32>
    %162 = vector.shape_cast %161 : vector<1x8x128xf32> to vector<8x128xf32>
    %163 = arith.subf %160, %162 : vector<8x128xf32>
    %164 = arith.mulf %163, %163 : vector<8x128xf32>
    %165 = arith.addf %158, %164 : vector<8x128xf32>
    %c29 = arith.constant 29 : index
    %c0_107 = arith.constant 0 : index
    %c0_108 = arith.constant 0 : index
    %166 = vector.load %arg1[%c29, %c0_107, %c0_108] : memref<55x8x128xf32, #tpu.memory_space<vmem>>, vector<1x8x128xf32>
    %167 = vector.shape_cast %166 : vector<1x8x128xf32> to vector<8x128xf32>
    %c53 = arith.constant 53 : index
    %c0_109 = arith.constant 0 : index
    %c0_110 = arith.constant 0 : index
    %168 = vector.load %arg1[%c53, %c0_109, %c0_110] : memref<55x8x128xf32, #tpu.memory_space<vmem>>, vector<1x8x128xf32>
    %169 = vector.shape_cast %168 : vector<1x8x128xf32> to vector<8x128xf32>
    %170 = arith.subf %167, %169 : vector<8x128xf32>
    %171 = arith.mulf %170, %170 : vector<8x128xf32>
    %172 = arith.addf %165, %171 : vector<8x128xf32>
    %cst_111 = arith.constant 0.000000e+00 : f32
    %173 = vector.broadcast %cst_111 : f32 to vector<8x128xf32>
    %174 = arith.select %31, %172, %173 : vector<8x128xi1>, vector<8x128xf32>
    %175 = arith.mulf %9, %9 : vector<8x128xf32>
    %176 = arith.mulf %19, %19 : vector<8x128xf32>
    %177 = arith.addf %175, %176 : vector<8x128xf32>
    %178 = arith.mulf %177, %33 : vector<8x128xf32>
    %cst_112 = arith.constant 1.400000e+01 : f32
    %179 = vector.broadcast %cst_112 : f32 to vector<8x128xf32>
    %180 = arith.divf %1, %179 : vector<8x128xf32>
    %cst_113 = arith.constant 1.400000e+01 : f32
    %181 = vector.broadcast %cst_113 : f32 to vector<8x128xf32>
    %182 = arith.divf %3, %181 : vector<8x128xf32>
    %cst_114 = arith.constant 5.000000e-01 : f32
    %183 = vector.broadcast %cst_114 : f32 to vector<8x128xf32>
    %184 = arith.mulf %183, %5 : vector<8x128xf32>
    %185 = arith.subf %180, %184 : vector<8x128xf32>
    %cst_115 = arith.constant 5.000000e-01 : f32
    %186 = vector.broadcast %cst_115 : f32 to vector<8x128xf32>
    %187 = arith.mulf %186, %7 : vector<8x128xf32>
    %188 = arith.subf %182, %187 : vector<8x128xf32>
    %cst_116 = arith.constant 5.000000e-01 : f32
    %189 = vector.broadcast %cst_116 : f32 to vector<8x128xf32>
    %190 = arith.mulf %189, %5 : vector<8x128xf32>
    %191 = arith.addf %180, %190 : vector<8x128xf32>
    %cst_117 = arith.constant 5.000000e-01 : f32
    %192 = vector.broadcast %cst_117 : f32 to vector<8x128xf32>
    %193 = arith.mulf %192, %7 : vector<8x128xf32>
    %194 = arith.addf %182, %193 : vector<8x128xf32>
    %cst_118 = arith.constant 1.400000e+01 : f32
    %195 = vector.broadcast %cst_118 : f32 to vector<8x128xf32>
    %196 = arith.divf %21, %195 : vector<8x128xf32>
    %cst_119 = arith.constant 1.400000e+01 : f32
    %197 = vector.broadcast %cst_119 : f32 to vector<8x128xf32>
    %198 = arith.divf %23, %197 : vector<8x128xf32>
    %cst_120 = arith.constant 5.000000e-01 : f32
    %199 = vector.broadcast %cst_120 : f32 to vector<8x128xf32>
    %200 = arith.mulf %199, %25 : vector<8x128xf32>
    %201 = arith.subf %196, %200 : vector<8x128xf32>
    %cst_121 = arith.constant 5.000000e-01 : f32
    %202 = vector.broadcast %cst_121 : f32 to vector<8x128xf32>
    %203 = arith.mulf %202, %27 : vector<8x128xf32>
    %204 = arith.subf %198, %203 : vector<8x128xf32>
    %cst_122 = arith.constant 5.000000e-01 : f32
    %205 = vector.broadcast %cst_122 : f32 to vector<8x128xf32>
    %206 = arith.mulf %205, %25 : vector<8x128xf32>
    %207 = arith.addf %196, %206 : vector<8x128xf32>
    %cst_123 = arith.constant 5.000000e-01 : f32
    %208 = vector.broadcast %cst_123 : f32 to vector<8x128xf32>
    %209 = arith.mulf %208, %27 : vector<8x128xf32>
    %210 = arith.addf %198, %209 : vector<8x128xf32>
    %211 = arith.minimumf %191, %207 : vector<8x128xf32>
    %212 = arith.maximumf %185, %201 : vector<8x128xf32>
    %213 = arith.subf %211, %212 : vector<8x128xf32>
    %cst_124 = arith.constant 0.000000e+00 : f32
    %214 = vector.broadcast %cst_124 : f32 to vector<8x128xf32>
    %215 = arith.maximumf %213, %214 : vector<8x128xf32>
    %216 = arith.minimumf %194, %210 : vector<8x128xf32>
    %217 = arith.maximumf %188, %204 : vector<8x128xf32>
    %218 = arith.subf %216, %217 : vector<8x128xf32>
    %cst_125 = arith.constant 0.000000e+00 : f32
    %219 = vector.broadcast %cst_125 : f32 to vector<8x128xf32>
    %220 = arith.maximumf %218, %219 : vector<8x128xf32>
    %221 = arith.mulf %215, %220 : vector<8x128xf32>
    %222 = arith.subf %191, %185 : vector<8x128xf32>
    %223 = arith.subf %194, %188 : vector<8x128xf32>
    %224 = arith.mulf %222, %223 : vector<8x128xf32>
    %225 = arith.subf %207, %201 : vector<8x128xf32>
    %226 = arith.subf %210, %204 : vector<8x128xf32>
    %227 = arith.mulf %225, %226 : vector<8x128xf32>
    %228 = arith.addf %224, %227 : vector<8x128xf32>
    %229 = arith.subf %228, %221 : vector<8x128xf32>
    %230 = arith.divf %221, %229 : vector<8x128xf32>
    %cst_126 = arith.constant 1.400000e+01 : f32
    %231 = vector.broadcast %cst_126 : f32 to vector<8x128xf32>
    %232 = arith.divf %11, %231 : vector<8x128xf32>
    %cst_127 = arith.constant 1.400000e+01 : f32
    %233 = vector.broadcast %cst_127 : f32 to vector<8x128xf32>
    %234 = arith.divf %13, %233 : vector<8x128xf32>
    %cst_128 = arith.constant 5.000000e-01 : f32
    %235 = vector.broadcast %cst_128 : f32 to vector<8x128xf32>
    %236 = arith.mulf %235, %15 : vector<8x128xf32>
    %237 = arith.subf %232, %236 : vector<8x128xf32>
    %cst_129 = arith.constant 5.000000e-01 : f32
    %238 = vector.broadcast %cst_129 : f32 to vector<8x128xf32>
    %239 = arith.mulf %238, %17 : vector<8x128xf32>
    %240 = arith.subf %234, %239 : vector<8x128xf32>
    %cst_130 = arith.constant 5.000000e-01 : f32
    %241 = vector.broadcast %cst_130 : f32 to vector<8x128xf32>
    %242 = arith.mulf %241, %15 : vector<8x128xf32>
    %243 = arith.addf %232, %242 : vector<8x128xf32>
    %cst_131 = arith.constant 5.000000e-01 : f32
    %244 = vector.broadcast %cst_131 : f32 to vector<8x128xf32>
    %245 = arith.mulf %244, %17 : vector<8x128xf32>
    %246 = arith.addf %234, %245 : vector<8x128xf32>
    %cst_132 = arith.constant 1.400000e+01 : f32
    %247 = vector.broadcast %cst_132 : f32 to vector<8x128xf32>
    %248 = arith.divf %21, %247 : vector<8x128xf32>
    %cst_133 = arith.constant 1.400000e+01 : f32
    %249 = vector.broadcast %cst_133 : f32 to vector<8x128xf32>
    %250 = arith.divf %23, %249 : vector<8x128xf32>
    %cst_134 = arith.constant 5.000000e-01 : f32
    %251 = vector.broadcast %cst_134 : f32 to vector<8x128xf32>
    %252 = arith.mulf %251, %25 : vector<8x128xf32>
    %253 = arith.subf %248, %252 : vector<8x128xf32>
    %cst_135 = arith.constant 5.000000e-01 : f32
    %254 = vector.broadcast %cst_135 : f32 to vector<8x128xf32>
    %255 = arith.mulf %254, %27 : vector<8x128xf32>
    %256 = arith.subf %250, %255 : vector<8x128xf32>
    %cst_136 = arith.constant 5.000000e-01 : f32
    %257 = vector.broadcast %cst_136 : f32 to vector<8x128xf32>
    %258 = arith.mulf %257, %25 : vector<8x128xf32>
    %259 = arith.addf %248, %258 : vector<8x128xf32>
    %cst_137 = arith.constant 5.000000e-01 : f32
    %260 = vector.broadcast %cst_137 : f32 to vector<8x128xf32>
    %261 = arith.mulf %260, %27 : vector<8x128xf32>
    %262 = arith.addf %250, %261 : vector<8x128xf32>
    %263 = arith.minimumf %243, %259 : vector<8x128xf32>
    %264 = arith.maximumf %237, %253 : vector<8x128xf32>
    %265 = arith.subf %263, %264 : vector<8x128xf32>
    %cst_138 = arith.constant 0.000000e+00 : f32
    %266 = vector.broadcast %cst_138 : f32 to vector<8x128xf32>
    %267 = arith.maximumf %265, %266 : vector<8x128xf32>
    %268 = arith.minimumf %246, %262 : vector<8x128xf32>
    %269 = arith.maximumf %240, %256 : vector<8x128xf32>
    %270 = arith.subf %268, %269 : vector<8x128xf32>
    %cst_139 = arith.constant 0.000000e+00 : f32
    %271 = vector.broadcast %cst_139 : f32 to vector<8x128xf32>
    %272 = arith.maximumf %270, %271 : vector<8x128xf32>
    %273 = arith.mulf %267, %272 : vector<8x128xf32>
    %274 = arith.subf %243, %237 : vector<8x128xf32>
    %275 = arith.subf %246, %240 : vector<8x128xf32>
    %276 = arith.mulf %274, %275 : vector<8x128xf32>
    %277 = arith.subf %259, %253 : vector<8x128xf32>
    %278 = arith.subf %262, %256 : vector<8x128xf32>
    %279 = arith.mulf %277, %278 : vector<8x128xf32>
    %280 = arith.addf %276, %279 : vector<8x128xf32>
    %281 = arith.subf %280, %273 : vector<8x128xf32>
    %282 = arith.divf %273, %281 : vector<8x128xf32>
    %283 = arith.cmpf oge, %230, %282 : vector<8x128xf32>
    %284 = arith.select %283, %1, %11 : vector<8x128xi1>, vector<8x128xf32>
    %285 = arith.select %283, %3, %13 : vector<8x128xi1>, vector<8x128xf32>
    %286 = arith.select %283, %5, %15 : vector<8x128xi1>, vector<8x128xf32>
    %287 = arith.select %283, %7, %17 : vector<8x128xi1>, vector<8x128xf32>
    %288 = arith.select %283, %9, %19 : vector<8x128xi1>, vector<8x128xf32>
    %289 = arith.select %283, %230, %282 : vector<8x128xi1>, vector<8x128xf32>
    %290 = arith.subf %284, %21 : vector<8x128xf32>
    %291 = arith.mulf %290, %290 : vector<8x128xf32>
    %292 = arith.subf %285, %23 : vector<8x128xf32>
    %293 = arith.mulf %292, %292 : vector<8x128xf32>
    %294 = arith.addf %291, %293 : vector<8x128xf32>
    %295 = math.sqrt %286 : vector<8x128xf32>
    %296 = math.sqrt %25 : vector<8x128xf32>
    %297 = arith.subf %295, %296 : vector<8x128xf32>
    %298 = arith.mulf %297, %297 : vector<8x128xf32>
    %299 = math.sqrt %287 : vector<8x128xf32>
    %300 = math.sqrt %27 : vector<8x128xf32>
    %301 = arith.subf %299, %300 : vector<8x128xf32>
    %302 = arith.mulf %301, %301 : vector<8x128xf32>
    %303 = arith.addf %298, %302 : vector<8x128xf32>
    %304 = arith.addf %294, %303 : vector<8x128xf32>
    %cst_140 = arith.constant 0.000000e+00 : f32
    %305 = vector.broadcast %cst_140 : f32 to vector<8x128xf32>
    %306 = arith.select %31, %304, %305 : vector<8x128xi1>, vector<8x128xf32>
    %307 = arith.subf %288, %289 : vector<8x128xf32>
    %308 = arith.mulf %307, %307 : vector<8x128xf32>
    %cst_141 = arith.constant 0.000000e+00 : f32
    %309 = vector.broadcast %cst_141 : f32 to vector<8x128xf32>
    %310 = arith.select %31, %308, %309 : vector<8x128xi1>, vector<8x128xf32>
    %311 = vector.shape_cast %174 : vector<8x128xf32> to vector<1x8x128xf32>
    %cst_142 = arith.constant dense<0.000000e+00> : vector<8x128xf32>
    %312 = vector.multi_reduction <add>, %311, %cst_142 [0] : vector<1x8x128xf32> to vector<8x128xf32>
    %c0_143 = arith.constant 0 : index
    %c0_144 = arith.constant 0 : index
    %313 = vector.load %arg2[%c0_143, %c0_144] : memref<32x128xf32, #tpu.memory_space<vmem>>, vector<8x128xf32>
    tpu.vector_store %arg2[%c0_143, %c0_144], %312 {strides = array<i32>} : memref<32x128xf32, #tpu.memory_space<vmem>>, vector<8x128xf32>,
    %314 = vector.shape_cast %178 : vector<8x128xf32> to vector<1x8x128xf32>
    %cst_145 = arith.constant dense<0.000000e+00> : vector<8x128xf32>
    %315 = vector.multi_reduction <add>, %314, %cst_145 [0] : vector<1x8x128xf32> to vector<8x128xf32>
    %c8_146 = arith.constant 8 : index
    %c0_147 = arith.constant 0 : index
    %316 = vector.load %arg2[%c8_146, %c0_147] : memref<32x128xf32, #tpu.memory_space<vmem>>, vector<8x128xf32>
    tpu.vector_store %arg2[%c8_146, %c0_147], %315 {strides = array<i32>} : memref<32x128xf32, #tpu.memory_space<vmem>>, vector<8x128xf32>,
    %317 = vector.shape_cast %306 : vector<8x128xf32> to vector<1x8x128xf32>
    %cst_148 = arith.constant dense<0.000000e+00> : vector<8x128xf32>
    %318 = vector.multi_reduction <add>, %317, %cst_148 [0] : vector<1x8x128xf32> to vector<8x128xf32>
    %c16_149 = arith.constant 16 : index
    %c0_150 = arith.constant 0 : index
    %319 = vector.load %arg2[%c16_149, %c0_150] : memref<32x128xf32, #tpu.memory_space<vmem>>, vector<8x128xf32>
    tpu.vector_store %arg2[%c16_149, %c0_150], %318 {strides = array<i32>} : memref<32x128xf32, #tpu.memory_space<vmem>>, vector<8x128xf32>,
    %320 = vector.shape_cast %310 : vector<8x128xf32> to vector<1x8x128xf32>
    %cst_151 = arith.constant dense<0.000000e+00> : vector<8x128xf32>
    %321 = vector.multi_reduction <add>, %320, %cst_151 [0] : vector<1x8x128xf32> to vector<8x128xf32>
    %c24_152 = arith.constant 24 : index
    %c0_153 = arith.constant 0 : index
    %322 = vector.load %arg2[%c24_152, %c0_153] : memref<32x128xf32, #tpu.memory_space<vmem>>, vector<8x128xf32>
    tpu.vector_store %arg2[%c24_152, %c0_153], %321 {strides = array<i32>} : memref<32x128xf32, #tpu.memory_space<vmem>>, vector<8x128xf32>,
    return
  }
  func.func @transform_0(%arg0: i32) -> (i32, i32, i32) {
    %c0_i32 = arith.constant 0 : i32
    %c0_i32_0 = arith.constant 0 : i32
    %c0_i32_1 = arith.constant 0 : i32
    return %c0_i32, %arg0, %c0_i32_0 : i32, i32, i32
  }
  func.func @transform_1(%arg0: i32) -> (i32, i32) {
    %c0_i32 = arith.constant 0 : i32
    %c0_i32_0 = arith.constant 0 : i32
    return %arg0, %c0_i32 : i32, i32
  }
}

</mosaic_0001>

<bundles_post_ra>
// kernel: tpu_custom_call.1
= control target key start
LH: loop header
LB: loop body
LE: loop exit
PB: predicated region body
PF: predicated region fallthrough
CT: control target
= control target key end

     0   :  { %6 = vsyncpa [#allocation3], 0  ;;  %s556_s0 = inlined_call_operand.hbm [shape: f32[55,8,128], index: 0, kind: input, shape index: {}]   ;;  %s557_s1 = inlined_call_operand.hbm [shape: f32[32,128], index: 1, kind: output, shape index: {}]  }
   0x1   :  { %7 = vsyncpa [#allocation4], 0  ;;  %s397_s6 = smov [#allocation2]   ;;  %s349_s10 = scalar_lea.hbm %s556_s0, 7040 }
   0x2   :  { %s13_s7 = sshll.u32 %s397_s6, 4  ;;  %p350_p0 = scmp.ne.s32.totalorder %s556_s0, %s349_s10  ;;  %s14_s7 = int_to_ptr.vmem [resolvable:$true] %s13_s7 }
   0x3   :  { %p353_p1 = scmp.lt.u32.totalorder %s349_s10, %s556_s0 }
   0x5   :  { %p355_p2 = pnand %p353_p1, %p350_p0 }
   0x7   :  { %358 = shalt.err (!%p355_p2)
}
   0x8   :  { %s359_s15 = scalar_lea.vmem %s14_s7, 7040  ;;  %p364_p4 = scmp.lt.s32.totalorder %s14_s7, %s14_s7 }
   0x9   :  { %p360_p3 = scmp.ne.s32.totalorder %s14_s7, %s359_s15  ;;  %p365_p5 = scmp.lt.s32.totalorder %s359_s15, %s359_s15 }
   0xb   :  { %p366_p6 = por %p365_p5, %p364_p4 }
   0xd   :  { %p367_p7 = pnand %p366_p6, %p360_p3 }
   0xf   :  { %370 = shalt.err (!%p367_p7)
}
  0x10   :  { %s398_s16 = smov 128   ;;  %s399_s17 = smov 8  }
  0x11   :  { %19 = dma.hbm_to_vmem [thread:$0]  %s556_s0, 7040, %s14_s7, [#allocation3], %s398_s16, %s398_s16, %s399_s17  }
  0x12   :  { %393 = dma.done.wait [#allocation3], 7040  }
  0x13   :  { %394 = vsyncadd [#allocation3], 4294960256  ;;  %v55_v0 = vld [vmem:[#allocation2 + $0x50] sm:$0xff]  ;;  %v61_v3 = vld [vmem:[#allocation2 + $0x58] sm:$0xff]  ;;  %s400_s0 = smov [#allocation5]  }
  0x14   :  { %v57_v1 = vld [vmem:[#allocation2 + $0x110] sm:$0xff]  ;;  %v63_v4 = vld [vmem:[#allocation2 + $0x118] sm:$0xff]  ;;  %v68_v5 = vld [vmem:[#allocation2 + $0x60] sm:$0xff]  ;;  %s321_s20 = sshll.u32 %s400_s0, 4  ;;  %s322_s20 = int_to_ptr.vmem [resolvable:$true] %s321_s20 }
  0x15   :  { %v58_v2 = vsub.f32 %v55_v0, %v57_v1  ;;  %v64_v6 = vsub.f32 %v61_v3, %v63_v4  ;;  %v70_v7 = vld [vmem:[#allocation2 + $0x120] sm:$0xff]  ;;  %v75_v8 = vld [vmem:[#allocation2 + $0x68] sm:$0xff]  ;;  %v82_v13 = vld [vmem:[#allocation2 + $0x70] sm:$0xff]  ;;  %s371_s21 = scalar_lea.vmem %s322_s20, 512  ;;  %p376_p9 = scmp.lt.s32.totalorder %s322_s20, %s322_s20 }
  0x16   :  { %v77_v9 = vld [vmem:[#allocation2 + $0x128] sm:$0xff]  ;;  %v71_v11 = vsub.f32 %v68_v5, %v70_v7  ;;  %v84_v14 = vld [vmem:[#allocation2 + $0x130] sm:$0xff]  ;;  %v89_v15 = vld [vmem:[#allocation2 + $0x78] sm:$0xff]  ;;  %p372_p8 = scmp.ne.s32.totalorder %s322_s20, %s371_s21  ;;  %p377_p10 = scmp.lt.s32.totalorder %s371_s21, %s371_s21 }
  0x17   :  { %v59_v10 = vmul.f32 %v58_v2, %v58_v2  ;;  %v78_v12 = vsub.f32 %v75_v8, %v77_v9  ;;  %v65_v16 = vmul.f32 %v64_v6, %v64_v6  ;;  %v85_v17 = vsub.f32 %v82_v13, %v84_v14  ;;  %v91_v18 = vld [vmem:[#allocation2 + $0x138] sm:$0xff]  ;;  %v96_v19 = vld [vmem:[#allocation2 + $0x80] sm:$0xff]  ;;  %v103_v22 = vld [vmem:[#allocation2 + $0x88] sm:$0xff] }
  0x18   :  { %v98_v20 = vld [vmem:[#allocation2 + $0x140] sm:$0xff]  ;;  %v72_v21 = vmul.f32 %v71_v11, %v71_v11  ;;  %v105_v23 = vld [vmem:[#allocation2 + $0x148] sm:$0xff]  ;;  %v110_v24 = vld [vmem:[#allocation2 + $0x90] sm:$0xff]  ;;  %v92_v27 = vsub.f32 %v89_v15, %v91_v18  ;;  %p378_p11 = por %p377_p10, %p376_p9 }
  0x19   :  { %v66_v25 = vadd.f32 %v65_v16, %v59_v10  ;;  %v79_v26 = vmul.f32 %v78_v12, %v78_v12  ;;  %v112_v28 = vld [vmem:[#allocation2 + $0x150] sm:$0xff]  ;;  %v117_v29 = vld [vmem:[#allocation2 + $0x98] sm:$0xff]  ;;  %v124_v31 = vld [vmem:[#allocation2 + $0xa0] sm:$0xff]  ;;  %v86_v35 = vmul.f32 %v85_v17, %v85_v17  ;;  %v99_v36 = vsub.f32 %v96_v19, %v98_v20 }
  0x1a   :  { %v119_v30 = vld [vmem:[#allocation2 + $0x158] sm:$0xff]  ;;  %v126_v32 = vld [vmem:[#allocation2 + $0x160] sm:$0xff]  ;;  %v131_v33 = vld [vmem:[#allocation2 + $0xa8] sm:$0xff]  ;;  %v106_v37 = vsub.f32 %v103_v22, %v105_v23  ;;  %v113_v42 = vsub.f32 %v110_v24, %v112_v28  ;;  %v93_v48 = vmul.f32 %v92_v27, %v92_v27  ;;  %p379_p12 = pnand %p378_p11, %p372_p8 }
  0x1b   :  { %v73_v34 = vadd.f32 %v72_v21, %v66_v25  ;;  %v133_v38 = vld [vmem:[#allocation2 + $0x168] sm:$0xff]  ;;  %v138_v39 = vld [vmem:[#allocation2 + $0xb0] sm:$0xff]  ;;  %v120_v43 = vsub.f32 %v117_v29, %v119_v30  ;;  %v127_v44 = vsub.f32 %v124_v31, %v126_v32  ;;  %v145_v45 = vld [vmem:[#allocation2 + $0xb8] sm:$0xff]  ;;  %v100_v55 = vmul.f32 %v99_v36, %v99_v36 }
  0x1c   :  { %v140_v40 = vld [vmem:[#allocation2 + $0x170] sm:$0xff]  ;;  %v147_v46 = vld [vmem:[#allocation2 + $0x178] sm:$0xff]  ;;  %v134_v49 = vsub.f32 %v131_v33, %v133_v38  ;;  %v152_v51 = vld [vmem:[#allocation2 + $0xc0] sm:$0xff]  ;;  %v107_v56 = vmul.f32 %v106_v37, %v106_v37  ;;  %v114_v60 = vmul.f32 %v113_v42, %v113_v42 }
  0x1d   :  { %v426_v41 = vld [vmem:[#allocation2 + $0x1b0] sm:$0xff]  ;;  %v80_v47 = vadd.f32 %v79_v26, %v73_v34  ;;  %v141_v50 = vsub.f32 %v138_v39, %v140_v40  ;;  %v154_v52 = vld [vmem:[#allocation2 + $0x180] sm:$0xff]  ;;  %v148_v53 = vsub.f32 %v145_v45, %v147_v46  ;;  %v159_v57 = vld [vmem:[#allocation2 + $0xc8] sm:$0xff]  ;;  %v121_v61 = vmul.f32 %v120_v43, %v120_v43 }
  0x1e   :  { %v161_v58 = vld [vmem:[#allocation2 + $0x188] sm:$0xff]  ;;  %v53_v59 = vsub.f32 1.0, %v426_v41  ;;  %v128_v62 = vmul.f32 %v127_v44, %v127_v44  ;;  %v155_v63 = vsub.f32 %v152_v51, %v154_v52  ;;  %v166_v0 = vld [vmem:[#allocation2 + $0xd0] sm:$0xff]  ;;  %v429_v2 = vld [vmem:[#allocation2 + $0x20] sm:$0xff]  ;;  %v135_v4 = vmul.f32 %v134_v49, %v134_v49 }
  0x1f   :  { %v87_v54 = vadd.f32 %v86_v35, %v80_v47  ;;  %v168_v1 = vld [vmem:[#allocation2 + $0x190] sm:$0xff]  ;;  %v431_v5 = vmul.f32 %v141_v50, %v141_v50  ;;  %v433_v6 = vld [vmem:[#allocation2 + $0x48] sm:$0xff]  ;;  %v194_v7 = vmul.f32 %v429_v2, %v429_v2  ;;  %v437_v8 = vld [vmem:[#allocation2] sm:$0xff]  ;;  %v441_v10 = vmul.f32 %v148_v53, %v148_v53 }
  0x20   :  { %v439_v9 = vld [vmem:[#allocation2 + $0x8] sm:$0xff]  ;;  %v443_v11 = vsub.f32 %v159_v57, %v161_v58  ;;  %v195_v12 = vmul.f32 %v433_v6, %v433_v6  ;;  %v447_v13 = vld [vmem:[#allocation2 + $0x10] sm:$0xff]  ;;  %v449_v14 = vld [vmem:[#allocation2 + $0x18] sm:$0xff]  ;;  %v199_v16 = vmul.f32 0.071428575, %v437_v8  ;;  %v454_v18 = vsub.f32 %v166_v0, %v168_v1 }
  0x21   :  { %v94_v3 = vadd.f32 %v93_v48, %v87_v54  ;;  %v451_v15 = vld [vmem:[#allocation2 + $0x28] sm:$0xff]  ;;  %v456_v19 = vld [vmem:[#allocation2 + $0x30] sm:$0xff]  ;;  %v200_v20 = vmul.f32 0.071428575, %v439_v9  ;;  %v201_v21 = vmul.f32 0.5, %v447_v13  ;;  %v460_v22 = vmul.f32 %v155_v63, %v155_v63  ;;  %v464_v25 = vld [vmem:[#allocation2 + $0xf8] sm:$0xff] }
  0x22   :  { %v196_v23 = vadd.f32 %v195_v12, %v194_v7  ;;  %v462_v24 = vld [vmem:[#allocation2 + $0xf0] sm:$0xff]  ;;  %v466_v26 = vld [vmem:[#allocation2 + $0x100] sm:$0xff]  ;;  %v203_v27 = vmul.f32 0.5, %v449_v14  ;;  %v234_v28 = vmul.f32 0.071428575, %v451_v15  ;;  %v470_v30 = vld [vmem:[#allocation2 + $0x38] sm:$0xff] }
  0x23   :  { %v101_v17 = vadd.f32 %v100_v55, %v94_v3  ;;  %v472_v31 = vld [vmem:[#allocation2 + $0x40] sm:$0xff]  ;;  %v474_v32 = vld [vmem:[#allocation2 + $0x108] sm:$0xff]  ;;  %v202_v33 = vsub.f32 %v199_v16, %v201_v21  ;;  %v205_v34 = vadd.f32 %v201_v21, %v199_v16  ;;  %v207_v35 = vmul.f32 0.071428575, %v462_v24 }
  0x24   :  { %v197_v36 = vmul.f32 %v196_v23, %v53_v59  ;;  %v204_v37 = vsub.f32 %v200_v20, %v203_v27  ;;  %v206_v38 = vadd.f32 %v203_v27, %v200_v20  ;;  %v208_v39 = vmul.f32 0.071428575, %v464_v25  ;;  %v175_v20 = vld [vmem:[#allocation2 + $0x198] sm:$0xff] }
  0x25   :  { %v108_v29 = vadd.f32 %v107_v56, %v101_v17  ;;  %v209_v42 = vmul.f32 0.5, %v466_v26  ;;  %v211_v43 = vmul.f32 0.5, %v474_v32  ;;  %v224_v44 = vsub.f32 %v205_v34, %v202_v33 }
  0x26   :  { %311 = vst [vmem:[#allocation5 + $0x8] sm:$0xff] %v197_v36  ;;  %v225_v45 = vsub.f32 %v206_v38, %v204_v37  ;;  %v235_v46 = vmul.f32 0.071428575, %v456_v19  ;;  %v236_v47 = vmul.f32 0.5, %v470_v30  ;;  %v238_v48 = vmul.f32 0.5, %v472_v31  ;;  %v180_v36 = vld [vmem:[#allocation2 + $0xe0] sm:$0xff] }
  0x27   :  { %v115_v40 = vadd.f32 %v114_v60, %v108_v29  ;;  %v210_v50 = vsub.f32 %v207_v35, %v209_v42  ;;  %v212_v51 = vsub.f32 %v208_v39, %v211_v43  ;;  %v213_v52 = vadd.f32 %v209_v42, %v207_v35 }
  0x28   :  { %v214_v53 = vadd.f32 %v211_v43, %v208_v39  ;;  %v226_v54 = vmul.f32 %v225_v45, %v224_v44  ;;  %v237_v55 = vsub.f32 %v234_v28, %v236_v47  ;;  %v239_v56 = vsub.f32 %v235_v46, %v238_v48  ;;  %v187_v45 = vld [vmem:[#allocation2 + $0xe8] sm:$0xff] }
  0x29   :  { %v122_v49 = vadd.f32 %v121_v61, %v115_v40  ;;  %v215_v58 = vmin.f32 %v205_v34, %v213_v52  ;;  %v216_v59 = vmax.f32 %v202_v33, %v210_v50  ;;  %v220_v60 = vmax.f32 %v204_v37, %v212_v51  ;;  %v173_v61 = vld [vmem:[#allocation2 + $0xd8] sm:$0xff]  ;;  %v182_v37 = vld [vmem:[#allocation2 + $0x1a0] sm:$0xff] }
  0x2a   :  { %v219_v63 = vmin.f32 %v206_v38, %v214_v53  ;;  %v227_v0 = vsub.f32 %v213_v52, %v210_v50  ;;  %v228_v1 = vsub.f32 %v214_v53, %v212_v51  ;;  %v240_v3 = vadd.f32 %v236_v47, %v234_v28 }
  0x2b   :  { %v129_v57 = vadd.f32 %v128_v62, %v122_v49  ;;  %v217_v12 = vsub.f32 %v215_v58, %v216_v59  ;;  %v241_v16 = vadd.f32 %v238_v48, %v235_v46  ;;  %v243_v17 = vmax.f32 %v237_v55, %v210_v50  ;;  %v189_v46 = vld [vmem:[#allocation2 + $0x1a8] sm:$0xff] }
  0x2c   :  { %v221_v21 = vsub.f32 %v219_v63, %v220_v60  ;;  %v229_v23 = vmul.f32 %v228_v1, %v227_v0  ;;  %v242_v27 = vmin.f32 %v240_v3, %v213_v52  ;;  %v247_v29 = vmax.f32 %v239_v56, %v212_v51 }
  0x2d   :  { %v136_v7 = vadd.f32 %v135_v4, %v129_v57  ;;  %v218_v62 = vmax.f32 %v217_v12, 0.0  ;;  %v246_v34 = vmin.f32 %v241_v16, %v214_v53  ;;  %v251_v33 = vsub.f32 %v240_v3, %v237_v55 }
  0x2e   :  { %v222_v38 = vmax.f32 %v221_v21, 0.0  ;;  %v230_v39 = vadd.f32 %v229_v23, %v226_v54  ;;  %v244_v28 = vsub.f32 %v242_v27, %v243_v17  ;;  %v252_v4 = vsub.f32 %v241_v16, %v239_v56 }
  0x2f   :  { %v143_v35 = vadd.f32 %v431_v5, %v136_v7  ;;  %v163_v42 = vmul.f32 %v443_v11, %v443_v11  ;;  %v176_v43 = vsub.f32 %v173_v61, %v175_v20  ;;  %v248_v44 = vsub.f32 %v246_v34, %v247_v29 }
  0x30   :  { %v223_v47 = vmul.f32 %v222_v38, %v218_v62  ;;  %v245_v5 = vmax.f32 %v244_v28, 0.0  ;;  %v253_v48 = vmul.f32 %v252_v4, %v251_v33  ;;  %v170_v50 = vmul.f32 %v454_v18, %v454_v18 }
  0x31   :  { %v150_v40 = vadd.f32 %v441_v10, %v143_v35  ;;  %v183_v51 = vsub.f32 %v180_v36, %v182_v37  ;;  %v249_v52 = vmax.f32 %v248_v44, 0.0  ;;  %v177_v55 = vmul.f32 %v176_v43, %v176_v43 }
  0x32   :  { %v231_v53 = vsub.f32 %v230_v39, %v223_v47  ;;  %v254_v54 = vadd.f32 %v253_v48, %v229_v23  ;;  %v190_v56 = vsub.f32 %v187_v45, %v189_v46  ;;  %vm52_vm0 = vcmp.gt.f32.partialorder %v426_v41, 0.5 }
  0x33   :  { %v157_v49 = vadd.f32 %v460_v22, %v150_v40  ;;  %v250_v11 = vmul.f32 %v249_v52, %v245_v5  ;;  %v184_v58 = vmul.f32 %v183_v51, %v183_v51  ;;  %vm279_vm2 = vcmp.eq.f32.partialorder %v466_v26, inf }
  0x34   :  { %337 = vrcp.f32 %v231_v53  ;;  %v191_v63 = vmul.f32 %v190_v56, %v190_v56  ;;  %vm295_vm3 = vcmp.eq.f32.partialorder %v474_v32, inf  ;;  %vm281_vm4 = vcmp.eq.f32.partialorder %v466_v26, 0.0 }
  0x35   :  { %v164_v10 = vadd.f32 %v163_v42, %v157_v49  ;;  %v255_v59 = vsub.f32 %v254_v54, %v250_v11  ;;  %vm297_vm5 = vcmp.eq.f32.partialorder %v474_v32, 0.0 }
  0x37   :  { %v171_v57 = vadd.f32 %v170_v50, %v164_v10  ;;  %339 = vrcp.f32 %v255_v59 }
  0x38   :  { %341 = vrsqrt.f32 %v466_v26 }
  0x39   :  { %v178_v60 = vadd.f32 %v177_v55, %v171_v57  ;;  %343 = vrsqrt.f32 %v474_v32 }
  0x3b   :  { %v185_v0 = vadd.f32 %v184_v58, %v178_v60 }
  0x3d   :  { %v192_v22 = vadd.f32 %v191_v63, %v185_v0 }
  0x3e   :  { %v338_v1 = vpop.eup %337 }
  0x3f   :  { %v193_v18 = vsel %vm52_vm0, %v192_v22, 0.0  ;;  %v233_v3 = vmul.f32 %v338_v1, %v223_v47 }
  0x40   :  { %309 = vst [vmem:[#allocation5] sm:$0xff] %v193_v18 }
  0x41   :  { %v340_v7 = vpop.eup %339 }
  0x42   :  { %v257_v12 = vmul.f32 %v340_v7, %v250_v11  ;;  %v342_v20 = vpop.eup %341 }
  0x43   :  { %v344_v21 = vpop.eup %343 }
  0x44   :  { %vm495_vm1 = vcmp.ge.f32.partialorder %v233_v3, %v257_v12 }
  0x45   :  { %v261_v17 = vsel %vm495_vm1, %v447_v13, %v470_v30  ;;  %v262_v61 = vsel %vm495_vm1, %v449_v14, %v472_v31  ;;  %v263_v23 = vsel %vm495_vm1, %v429_v2, %v433_v6  ;;  %v264_v27 = vsel %vm495_vm1, %v233_v3, %v257_v12 }
  0x46   :  { %345 = vrsqrt.f32 %v261_v17  ;;  %v305_v29 = vsub.f32 %v263_v23, %v264_v27  ;;  %v278_v13 = vmul.f32 %v342_v20, %v466_v26  ;;  %v294_v30 = vmul.f32 %v344_v21, %v474_v32 }
  0x47   :  { %347 = vrsqrt.f32 %v262_v61  ;;  %v259_v31 = vsel %vm495_vm1, %v437_v8, %v451_v15  ;;  %v260_v2 = vsel %vm495_vm1, %v439_v9, %v456_v19  ;;  %v282_v6 = vand.u32 2147483648, %v466_v26 }
  0x48   :  { %v306_v14 = vmul.f32 %v305_v29, %v305_v29  ;;  %v280_v62 = vsel %vm279_vm2, %v466_v26, %v278_v13  ;;  %v296_v34 = vsel %vm295_vm3, %v474_v32, %v294_v30  ;;  %v298_v8 = vand.u32 2147483648, %v474_v32 }
  0x49   :  { %v265_v33 = vsub.f32 %v259_v31, %v462_v24  ;;  %v267_v9 = vsub.f32 %v260_v2, %v464_v25  ;;  %vm272_vm6 = vcmp.eq.f32.partialorder %v261_v17, inf  ;;  %v275_v19 = vand.u32 2147483648, %v261_v17 }
  0x4a   :  { %v307_v35 = vsel %vm52_vm0, %v306_v14, 0.0  ;;  %vm274_vm7 = vcmp.eq.f32.partialorder %v261_v17, 0.0  ;;  %vm288_vm8 = vcmp.eq.f32.partialorder %v262_v61, inf  ;;  %v291_v38 = vand.u32 2147483648, %v262_v61 }
  0x4b   :  { %315 = vst [vmem:[#allocation5 + $0x18] sm:$0xff] %v307_v35  ;;  %v283_v39 = vsel %vm281_vm4, %v282_v6, %v280_v62  ;;  %vm290_vm9 = vcmp.eq.f32.partialorder %v262_v61, 0.0  ;;  %v299_v40 = vsel %vm297_vm5, %v298_v8, %v296_v34  ;;  %v266_v42 = vmul.f32 %v265_v33, %v265_v33 }
  0x4c   :  { %v268_v24 = vmul.f32 %v267_v9, %v267_v9 }
  0x4e   :  { %v269_v5 = vadd.f32 %v268_v24, %v266_v42 }
  0x50   :  { %v346_v15 = vpop.eup %345 }
  0x51   :  { %v348_v36 = vpop.eup %347  ;;  %v271_v37 = vmul.f32 %v346_v15, %v261_v17 }
  0x52   :  { %v287_v28 = vmul.f32 %v348_v36, %v262_v61 }
  0x53   :  { %v273_v4 = vsel %vm272_vm6, %v261_v17, %v271_v37 }
  0x54   :  { %v276_v43 = vsel %vm274_vm7, %v275_v19, %v273_v4  ;;  %v289_v25 = vsel %vm288_vm8, %v262_v61, %v287_v28 }
  0x55   :  { %v284_v44 = vsub.f32 %v276_v43, %v283_v39  ;;  %v292_v45 = vsel %vm290_vm9, %v291_v38, %v289_v25 }
  0x56   :  { %v300_v46 = vsub.f32 %v292_v45, %v299_v40 }
  0x57   :  { %v285_v47 = vmul.f32 %v284_v44, %v284_v44 }
  0x58   :  { %v301_v48 = vmul.f32 %v300_v46, %v300_v46 }
  0x5a   :  { %v302_v49 = vadd.f32 %v301_v48, %v285_v47 }
  0x5c   :  { %v303_v26 = vadd.f32 %v302_v49, %v269_v5 }
  0x5e   :  { %v304_v50 = vsel %vm52_vm0, %v303_v26, 0.0 }
  0x5f   :  { %313 = vst [vmem:[#allocation5 + $0x10] sm:$0xff] %v304_v50 }
  0x60   :  { %382 = shalt.err (!%p379_p12)
}
  0x61   :  { %s383_s24 = scalar_lea.hbm %s557_s1, 512 }
  0x62   :  { %p384_p13 = scmp.ne.s32.totalorder %s557_s1, %s383_s24  ;;  %p387_p0 = scmp.lt.u32.totalorder %s383_s24, %s557_s1 }
  0x64   :  { %p389_p1 = pnand %p387_p0, %p384_p13 }
  0x66   :  { %392 = shalt.err (!%p389_p1)
}
  0x67   :  { %327 = dma.vmem_to_hbm [thread:$0]  %s322_s20, 512, %s557_s1, [#allocation4], %s398_s16, %s398_s16, %s399_s17  }
  0x68   :  { %395 = dma.done.wait [#allocation4], 512  }
  0x69   :  { %396 = vsyncadd [#allocation4], 4294966784 }
  0x6a   :  { %331 = vsyncpa [#allocation3], 1 }
  0x6b   :  { %332 = vsyncpa [#allocation4], 1 }

</bundles_post_ra>
